<compile_context>
chip_gen: v6e
topology: v6e:2x2x1
jax: 0.10.0
libtpu: 0.0.40
codegen_flags: <defaults>
</compile_context>

<pallas_src>
import functools

import jax
import jax.numpy as jnp
from jax.experimental import pallas as pl
from jax.experimental.pallas import tpu as pltpu

# TODO(synk): verify eps / formula against the repo's custom LayerNormalization
# (PyTorch nn.LayerNorm default would be 1e-5 on the variance).
LN_EPS = 1e-6

LANE = 128     # TPU lane width   (last-dim tiling unit)
SUBLANE = 8    # TPU sublane width (second-to-last-dim tiling unit)


def _cdiv(a, b):
    return -(-a // b)


def _round_up(x, m):
    return _cdiv(x, m) * m


def _vmem_limit_bytes():
    """~80% of physical VMEM for this TPU generation (fallback: assume 128 MiB)."""
    try:
        cap = int(pltpu.get_tpu_info().vmem_capacity_bytes)
    except Exception:
        cap = 128 * 1024 * 1024
    return int(cap * 0.80)


def _block_spec(shape, index_map, single_buffer=False):
    """BlockSpec; single-buffer constant-index operands when supported."""
    if single_buffer:
        try:
            return pl.BlockSpec(shape, index_map, pipeline_mode=pl.Buffered(1))
        except TypeError:
            pass  # older API without pipeline_mode: fall back to default buffering
    return pl.BlockSpec(shape, index_map)


def _choose_ff_chunk(d_model_p, d_ff_p, tr, w_bytes, x_bytes, out_bytes, budget):
    """Widest d_ff chunk whose working set fits the VMEM budget."""
    def footprint(tk, w_bufs):
        weights = (d_model_p * tk + tk * d_model_p) * w_bytes * w_bufs   # W1 + W2 chunks
        io = tr * d_model_p * (x_bytes + out_bytes) * 2                  # x / out tiles (2-buf)
        acc = tr * d_model_p * 4                                         # f32 accumulator
        hidden = tr * tk * (4 + w_bytes)                                 # f32 h + casted h
        small = (tk + 3 * d_model_p) * 4 * 4                             # biases/gamma/beta slack
        return weights + io + acc + hidden + small

    if footprint(d_ff_p, 1) <= budget:          # fully resident, single-buffered weights
        return d_ff_p
    floor = max(LANE, min(512, d_ff_p))         # keep chunks >=512 wide when possible
    n = 2
    while True:
        tk = _round_up(_cdiv(d_ff_p, n), LANE)
        if footprint(tk, 2) <= budget or tk <= floor:
            return max(tk, LANE)
        n += 1


def _ffn_kernel(x_ref, w1_ref, b1_ref, w2_ref, b2_ref, g_ref, beta_ref,
                o_ref, acc_ref, *, d_model_real, eps, mask_lanes):
    # x_ref: (TR, d_model_p) token tile; grid = (row_tiles, d_ff chunks).
    kff = pl.program_id(1)

    @pl.when(kff == 0)
    def _():
        acc_ref[...] = jnp.zeros_like(acc_ref)

    # conv1 (1x1) == x @ W1 + b1, ReLU;  conv2 (1x1) == h @ W2 (+ b2 at the end).
    # Matmuls run in the weights' dtype (bf16 default -> full-rate MXU), f32 accumulate.
    x_mm = x_ref[...].astype(w1_ref.dtype)
    h = jnp.dot(x_mm, w1_ref[...], preferred_element_type=jnp.float32) + b1_ref[...]
    h = jnp.maximum(h, 0.0).astype(w2_ref.dtype)   # cast right away: one (TR, tk_ff) copy live
    acc_ref[...] += jnp.dot(h, w2_ref[...], preferred_element_type=jnp.float32)

    @pl.when(kff == pl.num_programs(1) - 1)
    def _():
        # dropout: identity (eval-mode semantics).
        # TODO(synk): training-mode dropout (pltpu.prng_*) and backward pass not implemented.
        y = acc_ref[...] + b2_ref[...]
        z = x_ref[...].astype(jnp.float32) + y      # residual in f32

        if mask_lanes:
            # Padded lanes of z are exactly zero (zero-padded x, W2 cols, b2),
            # but mean/var must be taken over the real width only.
            lane = jax.lax.broadcasted_iota(jnp.int32, z.shape, dimension=1)
            mask = (lane < d_model_real).astype(jnp.float32)
            inv_n = 1.0 / float(d_model_real)
            mean = jnp.sum(z * mask, axis=-1, keepdims=True) * inv_n
            diff = (z - mean) * mask
            var = jnp.sum(diff * diff, axis=-1, keepdims=True) * inv_n
        else:
            mean = jnp.mean(z, axis=-1, keepdims=True)
            diff = z - mean
            var = jnp.mean(diff * diff, axis=-1, keepdims=True)

        normed = (z - mean) * jax.lax.rsqrt(var + eps)
        o_ref[...] = (normed * g_ref[...] + beta_ref[...]).astype(o_ref.dtype)


@functools.partial(jax.jit,
                   static_argnames=("tile_rows", "eps", "weights_dtype", "ff_chunk"))
def poswise_ffn(x, w1, b1, w2, b2, gamma, beta, *, tile_rows=512, eps=LN_EPS,
                weights_dtype=jnp.bfloat16, ff_chunk=None):
    """Fused position-wise FFN + residual + LayerNorm.

    x: (B, L, d_model); w1: (d_model, d_ff); w2: (d_ff, d_model).
    NOTE (PyTorch port): Conv1d(d_model, d_ff, 1).weight has shape
    (d_ff, d_model, 1) — pass weight.squeeze(-1).T as w1 (same for w2).
    weights_dtype: matmul dtype for W1/W2 (default bf16; pass jnp.float32 for
    exact-f32 matmuls). ff_chunk: force a d_ff chunk width (testing / tuning).
    """
    B, L, d_model = x.shape
    d_ff = w1.shape[1]
    rows = B * L

    # Lane-dense feature padding.
    d_model_p = _round_up(d_model, LANE)
    d_ff_p = _round_up(d_ff, LANE)

    # Balanced row tiling: padding waste < SUBLANE rows, and >=2 row tiles
    # whenever rows allow so v7x's two TensorCores both get work.
    n_row = max(1, _cdiv(rows, tile_rows))
    if n_row == 1 and rows > SUBLANE:
        n_row = 2
    tr = _round_up(_cdiv(rows, n_row), SUBLANE)
    rows_p = _round_up(rows, tr)
    n_row = rows_p // tr

    w_dt = jnp.dtype(weights_dtype) if weights_dtype is not None else w1.dtype
    vmem_limit = _vmem_limit_bytes()
    budget = int(vmem_limit * 0.75)

    # d_ff chunking: resident (single-buffered weights) when it fits, streamed otherwise.
    if ff_chunk is not None:
        tk_ff = min(_round_up(int(ff_chunk), LANE), d_ff_p)
    else:
        tk_ff = _choose_ff_chunk(d_model_p, d_ff_p, tr, w_dt.itemsize,
                                 x.dtype.itemsize, x.dtype.itemsize, budget)
    n_kff = _cdiv(d_ff_p, tk_ff)
    d_ff_p = n_kff * tk_ff
    resident = (n_kff == 1)

    x2 = jnp.pad(x.reshape(rows, d_model),
                 ((0, rows_p - rows), (0, d_model_p - d_model)))
    w1_p = jnp.pad(w1.astype(w_dt), ((0, d_model_p - d_model), (0, d_ff_p - d_ff)))
    w2_p = jnp.pad(w2.astype(w_dt), ((0, d_ff_p - d_ff), (0, d_model_p - d_model)))
    b1_p = jnp.pad(b1.astype(jnp.float32), (0, d_ff_p - d_ff)).reshape(1, d_ff_p)
    b2_p = jnp.pad(b2.astype(jnp.float32), (0, d_model_p - d_model)).reshape(1, d_model_p)
    g_p = jnp.pad(gamma.astype(jnp.float32), (0, d_model_p - d_model)).reshape(1, d_model_p)
    be_p = jnp.pad(beta.astype(jnp.float32), (0, d_model_p - d_model)).reshape(1, d_model_p)

    grid = (n_row, n_kff)

    weight_reads = 1 if resident else n_row
    cost = pl.CostEstimate(
        flops=4 * rows_p * d_model_p * d_ff_p,
        transcendentals=rows_p,
        bytes_accessed=(x2.size * x2.dtype.itemsize
                        + rows_p * d_model_p * x.dtype.itemsize
                        + (w1_p.size + w2_p.size) * w_dt.itemsize * weight_reads
                        + (b1_p.size + b2_p.size + g_p.size + be_p.size) * 4),
    )

    kernel = functools.partial(_ffn_kernel, d_model_real=d_model, eps=eps,
                               mask_lanes=(d_model_p != d_model))

    out2 = pl.pallas_call(
        kernel,
        out_shape=jax.ShapeDtypeStruct((rows_p, d_model_p), x.dtype),
        grid_spec=pltpu.PrefetchScalarGridSpec(
            num_scalar_prefetch=0,
            grid=grid,
            in_specs=[
                # x tile: resident across the kff sweep (index unchanged), re-DMA'd per row tile.
                pl.BlockSpec((tr, d_model_p), lambda i, k: (i, 0)),
                # W1 / b1 / W2: d_ff-chunked; single-buffered when fully resident.
                _block_spec((d_model_p, tk_ff), lambda i, k: (0, k), single_buffer=resident),
                _block_spec((1, tk_ff), lambda i, k: (0, k), single_buffer=resident),
                _block_spec((tk_ff, d_model_p), lambda i, k: (k, 0), single_buffer=resident),
                # b2 / gamma / beta: always constant -> single buffer.
                _block_spec((1, d_model_p), lambda i, k: (0, 0), single_buffer=True),
                _block_spec((1, d_model_p), lambda i, k: (0, 0), single_buffer=True),
                _block_spec((1, d_model_p), lambda i, k: (0, 0), single_buffer=True),
            ],
            out_specs=pl.BlockSpec((tr, d_model_p), lambda i, k: (i, 0)),
            scratch_shapes=[pltpu.VMEM((tr, d_model_p), jnp.float32)],
        ),
        compiler_params=pltpu.CompilerParams(
            dimension_semantics=("parallel", "arbitrary"),
            vmem_limit_bytes=vmem_limit,
        ),
        cost_estimate=cost,
    )(x2, w1_p, b1_p, w2_p, b2_p, g_p, be_p)

    return out2[:rows, :d_model].reshape(B, L, d_model)


def _reference(x, w1, b1, w2, b2, gamma, beta, eps=LN_EPS):
    x32 = x.astype(jnp.float32)
    h = jnp.maximum(x32 @ w1 + b1, 0.0)
    y = h @ w2 + b2
    z = x32 + y
    mean = jnp.mean(z, axis=-1, keepdims=True)
    var = jnp.mean((z - mean) ** 2, axis=-1, keepdims=True)
    return ((z - mean) * jax.lax.rsqrt(var + eps)) * gamma + beta


if __name__ == "__main__":
    # Small shapes consistent with the module's forward: (B, L, d_model).
    B, L, d_model, d_ff = 2, 8, 32, 64

    key = jax.random.PRNGKey(0)
    kx, k1, kb1, k2, kb2, k3, k4 = jax.random.split(key, 7)

    x = jax.random.normal(kx, (B, L, d_model), dtype=jnp.float32)

    # Conv1d weight (out, in, 1) is used here as an (in, out) matmul weight
    # (i.e. weight.squeeze(-1).T when porting).
    w1 = jax.random.normal(k1, (d_model, d_ff), dtype=jnp.float32) * (1.0 / jnp.sqrt(d_model))
    b1 = jax.random.normal(kb1, (d_ff,), dtype=jnp.float32) * 0.01
    w2 = jax.random.normal(k2, (d_ff, d_model), dtype=jnp.float32) * (1.0 / jnp.sqrt(d_ff))
    b2 = jax.random.normal(kb2, (d_model,), dtype=jnp.float32) * 0.01
    gamma = jnp.ones((d_model,), dtype=jnp.float32)
    beta = jnp.zeros((d_model,), dtype=jnp.float32)

    ref = _reference(x, w1, b1, w2, b2, gamma, beta)

    # 1) exact-f32 matmul path vs reference (tight tolerance).
    out_f32 = jax.block_until_ready(
        poswise_ffn(x, w1, b1, w2, b2, gamma, beta, weights_dtype=jnp.float32))
    assert out_f32.shape == (B, L, d_model)
    assert jnp.allclose(out_f32, ref, atol=1e-4, rtol=1e-4), "f32 path mismatch vs reference"

    # 2) default bf16 matmul path (full-rate MXU) vs f32 reference (bf16-level tolerance).
    out_bf16 = jax.block_until_ready(poswise_ffn(x, w1, b1, w2, b2, gamma, beta))
    assert jnp.allclose(out_bf16, ref, atol=5e-2, rtol=5e-2), "bf16 path mismatch vs reference"

    # 3) streamed-d_ff path (forced chunking) correctness check.
    d_ff2 = 256
    w1b = jax.random.normal(k3, (d_model, d_ff2), dtype=jnp.float32) * (1.0 / jnp.sqrt(d_model))
    w2b = jax.random.normal(k4, (d_ff2, d_model), dtype=jnp.float32) * (1.0 / jnp.sqrt(d_ff2))
    b1b = jnp.zeros((d_ff2,), dtype=jnp.float32)
    ref2 = _reference(x, w1b, b1b, w2b, b2, gamma, beta)
    out_ck = jax.block_until_ready(
        poswise_ffn(x, w1b, b1b, w2b, b2, gamma, beta,
                    weights_dtype=jnp.float32, ff_chunk=128))
    assert jnp.allclose(out_ck, ref2, atol=1e-4, rtol=1e-4), "chunked path mismatch vs reference"

    print("KERNEL_OK")
</pallas_src>

<mosaic_0001>
module attributes {stable_mosaic.version = 11 : i64} {
  func.func @_ffn_kernel(%arg0: i32, %arg1: i32, %arg2: memref<8x128xf32, #tpu.memory_space<vmem>>, %arg3: memref<128x128xf32, #tpu.memory_space<vmem>>, %arg4: memref<1x128xf32, #tpu.memory_space<vmem>>, %arg5: memref<128x128xf32, #tpu.memory_space<vmem>>, %arg6: memref<1x128xf32, #tpu.memory_space<vmem>>, %arg7: memref<1x128xf32, #tpu.memory_space<vmem>>, %arg8: memref<1x128xf32, #tpu.memory_space<vmem>>, %arg9: memref<8x128xf32, #tpu.memory_space<vmem>>, %arg10: memref<8x128xf32, #tpu.memory_space<vmem>>) attributes {dimension_semantics = [#tpu.dimension_semantics<parallel>, #tpu.dimension_semantics<arbitrary>], iteration_bounds = array<i64: 2, 1>, scalar_prefetch = 0 : i64, scratch_operands = 1 : i64, tpu.core_type = #tpu.core_type<tc>, window_params = [{transform_indices = @transform_0, window_bounds = array<i64: 8, 128>}, {pipeline_mode = #tpu.pipeline_mode<synchronous>, transform_indices = @transform_1, window_bounds = array<i64: 128, 128>}, {pipeline_mode = #tpu.pipeline_mode<synchronous>, transform_indices = @transform_2, window_bounds = array<i64: 1, 128>}, {pipeline_mode = #tpu.pipeline_mode<synchronous>, transform_indices = @transform_3, window_bounds = array<i64: 128, 128>}, {pipeline_mode = #tpu.pipeline_mode<synchronous>, transform_indices = @transform_4, window_bounds = array<i64: 1, 128>}, {pipeline_mode = #tpu.pipeline_mode<synchronous>, transform_indices = @transform_5, window_bounds = array<i64: 1, 128>}, {pipeline_mode = #tpu.pipeline_mode<synchronous>, transform_indices = @transform_6, window_bounds = array<i64: 1, 128>}, {transform_indices = @transform_7, window_bounds = array<i64: 8, 128>}]} {
    %c0_i32 = arith.constant 0 : i32
    %0 = arith.cmpi eq, %arg1, %c0_i32 : i32
    %1 = arith.extui %0 : i1 to i32
    %c0_i32_0 = arith.constant 0 : i32
    %2 = arith.cmpi ne, %1, %c0_i32_0 : i32
    scf.if %2 {
      %cst_16 = arith.constant 0.000000e+00 : f32
      %19 = vector.broadcast %cst_16 : f32 to vector<8x128xf32>
      %c0_17 = arith.constant 0 : index
      %c0_18 = arith.constant 0 : index
      %20 = vector.load %arg10[%c0_17, %c0_18] : memref<8x128xf32, #tpu.memory_space<vmem>>, vector<8x128xf32>
      tpu.vector_store %arg10[%c0_17, %c0_18], %19 {strides = array<i32>} : memref<8x128xf32, #tpu.memory_space<vmem>>, vector<8x128xf32>,
    } else {
    }
    %c0 = arith.constant 0 : index
    %c0_1 = arith.constant 0 : index
    %3 = vector.load %arg2[%c0, %c0_1] : memref<8x128xf32, #tpu.memory_space<vmem>>, vector<8x128xf32>
    %c0_2 = arith.constant 0 : index
    %c0_3 = arith.constant 0 : index
    %4 = vector.load %arg3[%c0_2, %c0_3] : memref<128x128xf32, #tpu.memory_space<vmem>>, vector<128x128xf32>
    %cst = arith.constant dense<0.000000e+00> : vector<8x128xf32>
    %5 = tpu.matmul %3, %4, %cst {dimension_numbers = #tpu.dot_dimension_numbers<[1], [0], [0], [1], [0, 0, 1, 1], [], []>} : vector<8x128xf32>, vector<128x128xf32>, vector<8x128xf32> -> vector<8x128xf32>
    %c0_4 = arith.constant 0 : index
    %c0_5 = arith.constant 0 : index
    %6 = vector.load %arg4[%c0_4, %c0_5] : memref<1x128xf32, #tpu.memory_space<vmem>>, vector<1x128xf32>
    %7 = vector.broadcast %6 : vector<1x128xf32> to vector<8x128xf32>
    %8 = arith.addf %5, %7 : vector<8x128xf32>
    %cst_6 = arith.constant 0.000000e+00 : f32
    %9 = vector.broadcast %cst_6 : f32 to vector<8x128xf32>
    %10 = arith.maximumf %8, %9 : vector<8x128xf32>
    %c0_7 = arith.constant 0 : index
    %c0_8 = arith.constant 0 : index
    %11 = vector.load %arg10[%c0_7, %c0_8] : memref<8x128xf32, #tpu.memory_space<vmem>>, vector<8x128xf32>
    %c0_9 = arith.constant 0 : index
    %c0_10 = arith.constant 0 : index
    %12 = vector.load %arg5[%c0_9, %c0_10] : memref<128x128xf32, #tpu.memory_space<vmem>>, vector<128x128xf32>
    %cst_11 = arith.constant dense<0.000000e+00> : vector<8x128xf32>
    %13 = tpu.matmul %10, %12, %cst_11 {dimension_numbers = #tpu.dot_dimension_numbers<[1], [0], [0], [1], [0, 0, 1, 1], [], []>} : vector<8x128xf32>, vector<128x128xf32>, vector<8x128xf32> -> vector<8x128xf32>
    %14 = arith.addf %11, %13 : vector<8x128xf32>
    %c0_12 = arith.constant 0 : index
    %c0_13 = arith.constant 0 : index
    %15 = vector.load %arg10[%c0_12, %c0_13] : memref<8x128xf32, #tpu.memory_space<vmem>>, vector<8x128xf32>
    tpu.vector_store %arg10[%c0_12, %c0_13], %14 {strides = array<i32>} : memref<8x128xf32, #tpu.memory_space<vmem>>, vector<8x128xf32>,
    %c0_i32_14 = arith.constant 0 : i32
    %16 = arith.cmpi eq, %arg1, %c0_i32_14 : i32
    %17 = arith.extui %16 : i1 to i32
    %c0_i32_15 = arith.constant 0 : i32
    %18 = arith.cmpi ne, %17, %c0_i32_15 : i32
    scf.if %18 {
      %c0_16 = arith.constant 0 : index
      %c0_17 = arith.constant 0 : index
      %19 = vector.load %arg10[%c0_16, %c0_17] : memref<8x128xf32, #tpu.memory_space<vmem>>, vector<8x128xf32>
      %c0_18 = arith.constant 0 : index
      %c0_19 = arith.constant 0 : index
      %20 = vector.load %arg6[%c0_18, %c0_19] : memref<1x128xf32, #tpu.memory_space<vmem>>, vector<1x128xf32>
      %21 = vector.broadcast %20 : vector<1x128xf32> to vector<8x128xf32>
      %22 = arith.addf %19, %21 : vector<8x128xf32>
      %c0_20 = arith.constant 0 : index
      %c0_21 = arith.constant 0 : index
      %23 = vector.load %arg2[%c0_20, %c0_21] : memref<8x128xf32, #tpu.memory_space<vmem>>, vector<8x128xf32>
      %24 = arith.addf %23, %22 : vector<8x128xf32>
      %25 = tpu.iota {dimensions = array<i32: 1>} : vector<8x128xi32>
      %c32_i32 = arith.constant 32 : i32
      %26 = vector.broadcast %c32_i32 : i32 to vector<8x128xi32>
      %27 = arith.cmpi slt, %25, %26 : vector<8x128xi32>
      %28 = arith.extui %27 : vector<8x128xi1> to vector<8x128xi32>
      %29 = arith.sitofp %28 : vector<8x128xi32> to vector<8x128xf32>
      %30 = arith.mulf %24, %29 : vector<8x128xf32>
      %cst_22 = arith.constant dense<0.000000e+00> : vector<8xf32>
      %31 = vector.multi_reduction <add>, %30, %cst_22 [1] : vector<8x128xf32> to vector<8xf32>
      %32 = vector.shape_cast %31 : vector<8xf32> to vector<8x1xf32>
      %cst_23 = arith.constant 3.125000e-02 : f32
      %33 = vector.broadcast %cst_23 : f32 to vector<8x1xf32>
      %34 = arith.mulf %32, %33 : vector<8x1xf32>
      %35 = vector.broadcast %34 : vector<8x1xf32> to vector<8x128xf32>
      %36 = arith.subf %24, %35 : vector<8x128xf32>
      %37 = arith.mulf %36, %29 : vector<8x128xf32>
      %38 = arith.mulf %37, %37 : vector<8x128xf32>
      %cst_24 = arith.constant dense<0.000000e+00> : vector<8xf32>
      %39 = vector.multi_reduction <add>, %38, %cst_24 [1] : vector<8x128xf32> to vector<8xf32>
      %40 = vector.shape_cast %39 : vector<8xf32> to vector<8x1xf32>
      %cst_25 = arith.constant 3.125000e-02 : f32
      %41 = vector.broadcast %cst_25 : f32 to vector<8x1xf32>
      %42 = arith.mulf %40, %41 : vector<8x1xf32>
      %43 = vector.broadcast %34 : vector<8x1xf32> to vector<8x128xf32>
      %44 = arith.subf %24, %43 : vector<8x128xf32>
      %cst_26 = arith.constant 9.99999997E-7 : f32
      %45 = vector.broadcast %cst_26 : f32 to vector<8x1xf32>
      %46 = arith.addf %42, %45 : vector<8x1xf32>
      %47 = math.rsqrt %46 : vector<8x1xf32>
      %48 = vector.broadcast %47 : vector<8x1xf32> to vector<8x128xf32>
      %49 = arith.mulf %44, %48 : vector<8x128xf32>
      %c0_27 = arith.constant 0 : index
      %c0_28 = arith.constant 0 : index
      %50 = vector.load %arg7[%c0_27, %c0_28] : memref<1x128xf32, #tpu.memory_space<vmem>>, vector<1x128xf32>
      %51 = vector.broadcast %50 : vector<1x128xf32> to vector<8x128xf32>
      %52 = arith.mulf %49, %51 : vector<8x128xf32>
      %c0_29 = arith.constant 0 : index
      %c0_30 = arith.constant 0 : index
      %53 = vector.load %arg8[%c0_29, %c0_30] : memref<1x128xf32, #tpu.memory_space<vmem>>, vector<1x128xf32>
      %54 = vector.broadcast %53 : vector<1x128xf32> to vector<8x128xf32>
      %55 = arith.addf %52, %54 : vector<8x128xf32>
      %c0_31 = arith.constant 0 : index
      %c0_32 = arith.constant 0 : index
      %56 = vector.load %arg9[%c0_31, %c0_32] : memref<8x128xf32, #tpu.memory_space<vmem>>, vector<8x128xf32>
      tpu.vector_store %arg9[%c0_31, %c0_32], %55 {strides = array<i32>} : memref<8x128xf32, #tpu.memory_space<vmem>>, vector<8x128xf32>,
    } else {
    }
    return
  }
  func.func @transform_0(%arg0: i32, %arg1: i32) -> (i32, i32) {
    %c0_i32 = arith.constant 0 : i32
    %c0_i32_0 = arith.constant 0 : i32
    return %arg0, %c0_i32 : i32, i32
  }
  func.func @transform_1(%arg0: i32, %arg1: i32) -> (i32, i32) {
    %c0_i32 = arith.constant 0 : i32
    %c0_i32_0 = arith.constant 0 : i32
    return %c0_i32, %arg1 : i32, i32
  }
  func.func @transform_2(%arg0: i32, %arg1: i32) -> (i32, i32) {
    %c0_i32 = arith.constant 0 : i32
    %c0_i32_0 = arith.constant 0 : i32
    return %c0_i32, %arg1 : i32, i32
  }
  func.func @transform_3(%arg0: i32, %arg1: i32) -> (i32, i32) {
    %c0_i32 = arith.constant 0 : i32
    %c0_i32_0 = arith.constant 0 : i32
    return %arg1, %c0_i32 : i32, i32
  }
  func.func @transform_4(%arg0: i32, %arg1: i32) -> (i32, i32) {
    %c0_i32 = arith.constant 0 : i32
    %c0_i32_0 = arith.constant 0 : i32
    %c0_i32_1 = arith.constant 0 : i32
    return %c0_i32, %c0_i32_0 : i32, i32
  }
  func.func @transform_5(%arg0: i32, %arg1: i32) -> (i32, i32) {
    %c0_i32 = arith.constant 0 : i32
    %c0_i32_0 = arith.constant 0 : i32
    %c0_i32_1 = arith.constant 0 : i32
    return %c0_i32, %c0_i32_0 : i32, i32
  }
  func.func @transform_6(%arg0: i32, %arg1: i32) -> (i32, i32) {
    %c0_i32 = arith.constant 0 : i32
    %c0_i32_0 = arith.constant 0 : i32
    %c0_i32_1 = arith.constant 0 : i32
    return %c0_i32, %c0_i32_0 : i32, i32
  }
  func.func @transform_7(%arg0: i32, %arg1: i32) -> (i32, i32) {
    %c0_i32 = arith.constant 0 : i32
    %c0_i32_0 = arith.constant 0 : i32
    return %arg0, %c0_i32 : i32, i32
  }
}

</mosaic_0001>

<bundles_post_ra>
// kernel: poswise_ffn.1
= control target key start
LH: loop header
LB: loop body
LE: loop exit
PB: predicated region body
PF: predicated region fallthrough
CT: control target
= control target key end

     0   :  { %s896_s24 = smov 0   ;;  %s898_s25 = smov 0   ;;  %s1083_s0 = inlined_call_operand.vmem [shape: f32[16,128], index: 0, kind: input, shape index: {}]   ;;  %s1084_s1 = inlined_call_operand.vmem [shape: f32[128,128], index: 1, kind: input, shape index: {}]   ;;  %s1085_s2 = inlined_call_operand.vmem [shape: f32[1,128], index: 2, kind: input, shape index: {}]   ;;  %s1086_s3 = inlined_call_operand.vmem [shape: f32[128,128], index: 3, kind: input, shape index: {}]   ;;  %s1087_s4 = inlined_call_operand.vmem [shape: f32[1,128], index: 4, kind: input, shape index: {}]   ;;  %s1088_s5 = inlined_call_operand.vmem [shape: f32[1,128], index: 5, kind: input, shape index: {}]   ;;  %s1089_s6 = inlined_call_operand.vmem [shape: f32[1,128], index: 6, kind: input, shape index: {}]   ;;  %s1090_s7 = inlined_call_operand.vmem [shape: f32[16,128], index: 7, kind: output, shape index: {}]  }
   0x1   :  { %s900_s26 = smov 0  }
   0x2 LB: > { %s29_s27 = sadd.s32 1, %s848_s25  ;;  %p688_p0 = scmp.ge.s32.totalorder %s852_s26, 1  ;;  %s852_s26 = sphi %s900_s26, %s17_s26   ;;  %s848_s25 = sphi %s898_s25, %s1092_s25   ;;  %s844_s24 = sphi %s896_s24, %s1091_s24  }
   0x3   : > { %p31_p1 = scmp.ge.s32.totalorder %s29_s27, 2  ;;  %p276_p2 = scmp.lt.s32.totalorder %s852_s26, 3 }
   0x5   : > { %s1094_s27 = smov (%p31_p1, %s29_s27), 0  ;;  %p277_p3 = pnand %p688_p0, %p276_p2 }
   0x6   : > { %p318_p4 = scmp.lt.s32.totalorder (!%p277_p3), %s844_s24, 1 }
   0x7   : > { %280 = sbr.rel (%p277_p3) target bundleno = 750 (0x2ee), region = 48 }
   0xc   : > { %v360_v0 = vld [vmem:[%s1084_s1 + $0x78] sm:$0xff]  ;;  %v854_v1 = vmov 0.0   ;;  %v359_v2 = vld [vmem:[%s1084_s1 + $0x70] sm:$0xff]  ;;  %vm855_vm0 = vmmov 0   ;;  %v358_v3 = vld [vmem:[%s1084_s1 + $0x68] sm:$0xff]  ;;  %s1096_s24 = smov (!%p318_p4, %s844_s24), 1  ;;  %v542_v39 = vlaneseq }
   0xd   : > { %732 = vmatprep.subr.mxu0 %v854_v1  ;;  %764 = vmatprep.mubr.msk.f32.mxu0 %vm855_vm0, %v854_v1  ;;  %v357_v4 = vld [vmem:[%s1084_s1 + $0x60] sm:$0xff]  ;;  %v455_v5 = vld [vmem:[%s1086_s3 + $0x78] sm:$0xff]  ;;  %v454_v6 = vld [vmem:[%s1086_s3 + $0x70] sm:$0xff]  ;;  %s689_s15 = sshll.u32 %s1096_s24, 3 }
   0xe   : > { %733 = vmatpush3.msra.mxu0 %v360_v0  ;;  %767 = vmatprep.subr.mxu1 %v854_v1  ;;  %v356_v7 = vld [vmem:[%s1084_s1 + $0x58] sm:$0xff]  ;;  %v453_v8 = vld [vmem:[%s1086_s3 + $0x68] sm:$0xff]  ;;  %v355_v9 = vld [vmem:[%s1084_s1 + $0x50] sm:$0xff]  ;;  %s321_s28 = scalar_lea.vmem %s1083_s0, %s689_s15  ;;  %v543_v40 = vand.u32 127, %v542_v39  ;;  %s338_s8 = scalar_lea.vmem %s1090_s7, %s689_s15 }
   0xf   : > { %734 = vmatprep.subr.mxu0 %v854_v1  ;;  %799 = vmatprep.mubr.msk.f32.mxu1 %vm855_vm0, %v854_v1  ;;  %v452_v10 = vld [vmem:[%s1086_s3 + $0x60] sm:$0xff]  ;;  %v354_v11 = vld [vmem:[%s1084_s1 + $0x48] sm:$0xff]  ;;  %v451_v12 = vld [vmem:[%s1086_s3 + $0x58] sm:$0xff] }
  0x10   : > { %735 = vmatpush3.msra.mxu0 %v359_v2  ;;  %768 = vmatpush3.msra.mxu1 %v455_v5  ;;  %v353_v13 = vld [vmem:[%s1084_s1 + $0x40] sm:$0xff]  ;;  %v450_v14 = vld [vmem:[%s1086_s3 + $0x50] sm:$0xff]  ;;  %v352_v15 = vld [vmem:[%s1084_s1 + $0x38] sm:$0xff]  ;;  %vm544_vm1 = vcmp.lt.s32.totalorder %v543_v40, 32 }
  0x11   : > { %736 = vmatprep.subr.mxu0 %v854_v1  ;;  %769 = vmatprep.subr.mxu1 %v854_v1  ;;  %v449_v16 = vld [vmem:[%s1086_s3 + $0x48] sm:$0xff]  ;;  %v351_v17 = vld [vmem:[%s1084_s1 + $0x30] sm:$0xff]  ;;  %v448_v18 = vld [vmem:[%s1086_s3 + $0x40] sm:$0xff]  ;;  %v693_v45 = vsel %vm544_vm1, 1.0, %v854_v1 }
  0x12   : > { %737 = vmatpush3.msra.mxu0 %v358_v3  ;;  %770 = vmatpush3.msra.mxu1 %v454_v6  ;;  %v350_v19 = vld [vmem:[%s1084_s1 + $0x28] sm:$0xff]  ;;  %v447_v20 = vld [vmem:[%s1086_s3 + $0x38] sm:$0xff]  ;;  %v349_v21 = vld [vmem:[%s1084_s1 + $0x20] sm:$0xff] }
  0x13   : > { %738 = vmatprep.subr.mxu0 %v854_v1  ;;  %771 = vmatprep.subr.mxu1 %v854_v1  ;;  %v446_v22 = vld [vmem:[%s1086_s3 + $0x30] sm:$0xff]  ;;  %v348_v23 = vld [vmem:[%s1084_s1 + $0x18] sm:$0xff]  ;;  %v445_v24 = vld [vmem:[%s1086_s3 + $0x28] sm:$0xff] }
  0x14   : > { %739 = vmatpush3.msra.mxu0 %v357_v4  ;;  %772 = vmatpush3.msra.mxu1 %v453_v8  ;;  %v347_v25 = vld [vmem:[%s1084_s1 + $0x10] sm:$0xff]  ;;  %v444_v26 = vld [vmem:[%s1086_s3 + $0x20] sm:$0xff]  ;;  %v346_v27 = vld [vmem:[%s1084_s1 + $0x8] sm:$0xff] }
  0x15   : > { %740 = vmatprep.subr.mxu0 %v854_v1  ;;  %773 = vmatprep.subr.mxu1 %v854_v1  ;;  %v443_v28 = vld [vmem:[%s1086_s3 + $0x18] sm:$0xff]  ;;  %v345_v29 = vld [vmem:[%s1084_s1] sm:$0xff]  ;;  %v442_v31 = vld [vmem:[%s1086_s3 + $0x10] sm:$0xff] }
  0x16   : > { %741 = vmatpush3.msra.mxu0 %v356_v7  ;;  %774 = vmatpush3.msra.mxu1 %v452_v10  ;;  %v344_v30 = vld [vmem:[%s321_s28] sm:$0xff]  ;;  %v441_v32 = vld [vmem:[%s1086_s3 + $0x8] sm:$0xff] }
  0x17   : > { %742 = vmatprep.subr.mxu0 %v854_v1  ;;  %775 = vmatprep.subr.mxu1 %v854_v1  ;;  %v440_v33 = vld [vmem:[%s1086_s3] sm:$0xff] }
  0x18   : > { %743 = vmatpush3.msra.mxu0 %v355_v9  ;;  %776 = vmatpush3.msra.mxu1 %v451_v12  ;;  %v691_v34 = vld [vmem:[%s1085_s2] ss:$0 sm:$0xff] }
  0x19   : > { %744 = vmatprep.subr.mxu0 %v854_v1  ;;  %777 = vmatprep.subr.mxu1 %v854_v1  ;;  %v692_v41 = vld [vmem:[%s1087_s4] ss:$0 sm:$0xff] }
  0x1a   : > { %745 = vmatpush3.msra.mxu0 %v354_v11  ;;  %778 = vmatpush3.msra.mxu1 %v450_v14  ;;  %v694_v57 = vld [vmem:[%s1088_s5] ss:$0 sm:$0xff] }
  0x1b   : > { %746 = vmatprep.subr.mxu0 %v854_v1  ;;  %779 = vmatprep.subr.mxu1 %v854_v1  ;;  %v695_v59 = vld [vmem:[%s1089_s6] ss:$0 sm:$0xff] }
  0x1c   : > { %747 = vmatpush3.msra.mxu0 %v353_v13  ;;  %780 = vmatpush3.msra.mxu1 %v449_v16 }
  0x1d   : > { %748 = vmatprep.subr.mxu0 %v854_v1  ;;  %781 = vmatprep.subr.mxu1 %v854_v1 }
  0x1e   : > { %749 = vmatpush3.msra.mxu0 %v352_v15  ;;  %782 = vmatpush3.msra.mxu1 %v448_v18 }
  0x1f   : > { %750 = vmatprep.subr.mxu0 %v854_v1  ;;  %783 = vmatprep.subr.mxu1 %v854_v1 }
  0x20   : > { %751 = vmatpush3.msra.mxu0 %v351_v17  ;;  %784 = vmatpush3.msra.mxu1 %v447_v20 }
  0x21   : > { %752 = vmatprep.subr.mxu0 %v854_v1  ;;  %785 = vmatprep.subr.mxu1 %v854_v1 }
  0x22   : > { %753 = vmatpush3.msra.mxu0 %v350_v19  ;;  %786 = vmatpush3.msra.mxu1 %v446_v22 }
  0x23   : > { %754 = vmatprep.subr.mxu0 %v854_v1  ;;  %787 = vmatprep.subr.mxu1 %v854_v1 }
  0x24   : > { %755 = vmatpush3.msra.mxu0 %v349_v21  ;;  %788 = vmatpush3.msra.mxu1 %v445_v24 }
  0x25   : > { %756 = vmatprep.subr.mxu0 %v854_v1  ;;  %789 = vmatprep.subr.mxu1 %v854_v1 }
  0x26   : > { %757 = vmatpush3.msra.mxu0 %v348_v23  ;;  %790 = vmatpush3.msra.mxu1 %v444_v26 }
  0x27   : > { %758 = vmatprep.subr.mxu0 %v854_v1  ;;  %791 = vmatprep.subr.mxu1 %v854_v1 }
  0x28   : > { %759 = vmatpush3.msra.mxu0 %v347_v25  ;;  %792 = vmatpush3.msra.mxu1 %v443_v28 }
  0x29   : > { %760 = vmatprep.subr.mxu0 %v854_v1  ;;  %793 = vmatprep.subr.mxu1 %v854_v1 }
  0x2a   : > { %761 = vmatpush3.msra.mxu0 %v346_v27  ;;  %794 = vmatpush3.msra.mxu1 %v442_v31 }
  0x2b   : > { %762 = vmatprep.subr.mxu0 %v854_v1  ;;  %795 = vmatprep.subr.mxu1 %v854_v1 }
  0x2c   : > { %763 = vmatpush3.msra.mxu0 %v345_v29  ;;  %796 = vmatpush3.msra.mxu1 %v441_v32 }
  0x2d   : > { %765 = vmatmul.mubr.f32.vlgmr.msra.gmra.mxu0 %v344_v30  ;;  %797 = vmatprep.subr.mxu1 %v854_v1 }
  0x2e   : > { %798 = vmatpush3.msra.mxu1 %v440_v33 }
  0xed   : > { %v434_v35 = vpop.f32.mrf.mxu0 }
  0xee   : > { %v435_v36 = vadd.f32 %v691_v34, %v434_v35 }
  0xef   : > { %v766_v37 = vpop.f32.mrf.mxu0 }
  0xf0   : > { %v438_v38 = vmax.f32 %v435_v36, 0.0 }
  0xf2   : > { %800 = vmatmul.mubr.f32.vlgmr.msra.gmra.mxu1 %v438_v38 }
 0x1b2   : > { %v522_v42 = vpop.f32.mrf.mxu1 }
 0x1b3   : > { %v539_v43 = vadd.f32 %v692_v41, %v522_v42 }
 0x1b4   : > { %v801_v44 = vpop.f32.mrf.mxu1 }
 0x1b5   : > { %v541_v46 = vadd.f32 %v539_v43, %v344_v30 }
 0x1b7   : > { %v547_v47 = vmul.f32 %v693_v45, %v541_v46 }
 0x1b9   : > { %548 = vadd.xlane.f32.xlu0 %v547_v47 }
 0x242   : > { %v549_v48 = vpop.xlane.xlu0 %548 }
 0x243   : > { %v550_v49 = vmul.f32 0.03125, %v549_v48 }
 0x245   : > { %v551_v50 = vsub.f32 %v541_v46, %v550_v49 }
 0x247   : > { %v552_v51 = vmul.f32 %v693_v45, %v551_v50 }
 0x249   : > { %v553_v52 = vmul.f32 %v552_v51, %v552_v51 }
 0x24b   : > { %554 = vadd.xlane.f32.xlu0 %v553_v52 }
 0x2d4   : > { %v555_v53 = vpop.xlane.xlu0 %554 }
 0x2d5   : > { %v556_v54 = vmul.f32 0.03125, %v555_v53 }
 0x2d7   : > { %v557_v55 = vadd.f32 1e-06, %v556_v54 }
 0x2d9   : > { %828 = vrsqrt.f32 %v557_v55 }
 0x2e6   : > { %v829_v56 = vpop.eup %828 }
 0x2e7   : > { %v559_v58 = vmul.f32 %v829_v56, %v551_v50 }
 0x2e9   : > { %v567_v60 = vmul.f32 %v694_v57, %v559_v58 }
 0x2eb   : > { %v575_v61 = vadd.f32 %v695_v59, %v567_v60 }
 0x2ed   : > { %576 = vst [vmem:[%s338_s8] sm:$0xff] %v575_v61 }
 0x2ee PF: > { %s17_s26 = sadd.s32 1, %s852_s26   ;;  %s1091_s24 = smov %s848_s25 }
 0x2ef   : > { %p14_p5 = scmp.ge.s32.totalorder %s17_s26, 4   ;;  %s1092_s25 = smov %s1094_s27 }
 0x2f1   :  { %16 = sbr.rel (!%p14_p5) target bundleno = 2 (0x2), region = 95 }

</bundles_post_ra>
